<compile_context>
chip_gen: v7x
topology: tpu7x:2x2x1
jax: 0.10.0
libtpu: 0.0.40
codegen_flags: <defaults>
</compile_context>

<pallas_src>
import jax
import jax.numpy as jnp
from jax.experimental import pallas as pl
from jax.experimental.pallas import tpu as pltpu


def _logreg_kernel(x_ref, w_ref, b_ref, o_ref):
    # x_ref: (TB, N) VMEM tile, w_ref: (N, 1) VMEM (resident), b_ref: (1, 1) SMEM
    x = x_ref[...]                                   # (TB, N)
    w = w_ref[...]                                   # (N, 1)  -- no transpose needed
    # logits = x @ w + b  -> (TB, 1); MXU matmul, f32 accumulate.
    logits = jnp.dot(x, w, preferred_element_type=jnp.float32) + b_ref[0, 0]
    # sigmoid = 1 / (1 + exp(-z)); exp runs on the EUP (not on the critical path).
    o_ref[...] = (1.0 / (1.0 + jnp.exp(-logits))).astype(o_ref.dtype)


def logistic_regression_forward(x, weight, bias, *, block_batch=512):
    """sigmoid(x @ weight.T + bias) via a batch-tiled, pipelined Pallas kernel.

    x:      (batch, n_inputs) float32
    weight: (1, n_inputs)     float32   (nn.Linear.weight layout)
    bias:   (1,)              float32   (nn.Linear.bias layout)
    returns (batch, 1) float32
    """
    batch, n_inputs = x.shape
    x = x.astype(jnp.float32)

    # Pre-transpose the (tiny) weight to a column in the wrapper: (n_inputs, 1).
    w_col = weight.reshape(1, n_inputs).astype(jnp.float32).T
    bias_2d = bias.reshape(1, 1).astype(jnp.float32)

    # --- choose batch tile (multiple of 8 sublanes, VMEM-budget aware) -------
    bytes_per_row = n_inputs * 4
    # Keep 2 (double-buffer) * TB * n_inputs * 4B under ~12 MiB -> safe on all
    # generations (v5e 16 MiB scoped default, v7x 64 MiB physical VMEM).
    vmem_budget_bytes = 12 << 20
    max_rows = max(8, (vmem_budget_bytes // 2) // max(bytes_per_row, 1))
    tb = max(8, (min(block_batch, max_rows) // 8) * 8)

    num_tiles = pl.cdiv(batch, tb)
    padded_batch = num_tiles * tb

    # Zero-pad the batch tail so every block satisfies the (8, 128) tiling rule;
    # padded rows just compute sigmoid(bias) and are sliced off below.
    if padded_batch != batch:
        x = jnp.pad(x, ((0, padded_batch - batch), (0, 0)))

    out = pl.pallas_call(
        _logreg_kernel,
        out_shape=jax.ShapeDtypeStruct((padded_batch, 1), jnp.float32),
        grid=(num_tiles,),
        in_specs=[
            pl.BlockSpec((tb, n_inputs), lambda i: (i, 0)),    # x tile  -> VMEM (pipelined)
            pl.BlockSpec((n_inputs, 1), lambda i: (0, 0)),     # weight  -> VMEM (resident)
            pl.BlockSpec(memory_space=pltpu.SMEM),             # bias    -> SMEM scalar
        ],
        out_specs=pl.BlockSpec((tb, 1), lambda i: (i, 0)),
        compiler_params=pltpu.CompilerParams(
            dimension_semantics=("parallel",),                 # megacore shard on v7x
            vmem_limit_bytes=32 << 20,
        ),
        cost_estimate=pl.CostEstimate(
            flops=2 * padded_batch * n_inputs,
            transcendentals=padded_batch,
            bytes_accessed=4 * (padded_batch * n_inputs + n_inputs + padded_batch),
        ),
    )(x, w_col, bias_2d)

    return out[:batch]


def _reference(x, weight, bias):
    return jax.nn.sigmoid(x @ weight.T + bias[None, :])


if __name__ == "__main__":
    key = jax.random.PRNGKey(0)
    kx, kw, kb = jax.random.split(key, 3)

    batch, n_inputs = 100, 32   # non-multiple of the tile -> exercises padding path

    # Deterministic parameter init mimicking nn.Linear default:
    # uniform(-1/sqrt(n_inputs), 1/sqrt(n_inputs)).
    bound = 1.0 / jnp.sqrt(jnp.float32(n_inputs))
    weight = jax.random.uniform(kw, (1, n_inputs), jnp.float32, -bound, bound)
    bias = jax.random.uniform(kb, (1,), jnp.float32, -bound, bound)

    x = jax.random.normal(kx, (batch, n_inputs), jnp.float32)

    # Small block_batch so the test actually runs a multi-step pipelined grid.
    yhat = logistic_regression_forward(x, weight, bias, block_batch=32)
    yhat = jax.block_until_ready(yhat)

    ref = _reference(x, weight, bias)
    assert yhat.shape == (batch, 1), yhat.shape
    assert jnp.allclose(yhat, ref, atol=1e-5, rtol=1e-5), (
        f"max abs err = {jnp.max(jnp.abs(yhat - ref))}"
    )

    print("KERNEL_OK")
</pallas_src>

<mosaic_0001>
module attributes {stable_mosaic.version = 11 : i64} {
  func.func @_logreg_kernel(%arg0: i32, %arg1: memref<32x32xf32, #tpu.memory_space<vmem>>, %arg2: memref<32x1xf32, #tpu.memory_space<vmem>>, %arg3: memref<1x1xf32, #tpu.memory_space<smem>>, %arg4: memref<32x1xf32, #tpu.memory_space<vmem>>) attributes {dimension_semantics = [#tpu.dimension_semantics<parallel>], iteration_bounds = array<i64: 4>, scalar_prefetch = 0 : i64, scratch_operands = 0 : i64, tpu.core_type = #tpu.core_type<tc>, window_params = [{transform_indices = @transform_0, window_bounds = array<i64: 32, 32>}, {pipeline_mode = #tpu.pipeline_mode<synchronous>, transform_indices = @transform_1, window_bounds = array<i64: 32, 1>}, {transform_indices = @transform_2, window_bounds = array<i64: 1, 1>}, {transform_indices = @transform_3, window_bounds = array<i64: 32, 1>}]} {
    %c0 = arith.constant 0 : index
    %c0_0 = arith.constant 0 : index
    %0 = vector.load %arg1[%c0, %c0_0] : memref<32x32xf32, #tpu.memory_space<vmem>>, vector<32x32xf32>
    %c0_1 = arith.constant 0 : index
    %c0_2 = arith.constant 0 : index
    %1 = vector.load %arg2[%c0_1, %c0_2] : memref<32x1xf32, #tpu.memory_space<vmem>>, vector<32x1xf32>
    %cst = arith.constant dense<0.000000e+00> : vector<32x1xf32>
    %2 = tpu.matmul %0, %1, %cst {dimension_numbers = #tpu.dot_dimension_numbers<[1], [0], [0], [1], [0, 0, 1, 1], [], []>} : vector<32x32xf32>, vector<32x1xf32>, vector<32x1xf32> -> vector<32x1xf32>
    %c0_3 = arith.constant 0 : index
    %c0_4 = arith.constant 0 : index
    %3 = memref.load %arg3[%c0_3, %c0_4] : memref<1x1xf32, #tpu.memory_space<smem>>
    %4 = vector.broadcast %3 : f32 to vector<32x1xf32>
    %5 = arith.addf %2, %4 : vector<32x1xf32>
    %cst_5 = arith.constant 0.000000e+00 : f32
    %6 = vector.broadcast %cst_5 : f32 to vector<32x1xf32>
    %7 = arith.subf %6, %5 : vector<32x1xf32>
    %8 = math.exp %7 : vector<32x1xf32>
    %cst_6 = arith.constant 1.000000e+00 : f32
    %9 = vector.broadcast %cst_6 : f32 to vector<32x1xf32>
    %10 = arith.addf %9, %8 : vector<32x1xf32>
    %cst_7 = arith.constant 1.000000e+00 : f32
    %11 = vector.broadcast %cst_7 : f32 to vector<32x1xf32>
    %12 = arith.divf %11, %10 : vector<32x1xf32>
    %c0_8 = arith.constant 0 : index
    %c0_9 = arith.constant 0 : index
    %13 = vector.load %arg4[%c0_8, %c0_9] : memref<32x1xf32, #tpu.memory_space<vmem>>, vector<32x1xf32>
    tpu.vector_store %arg4[%c0_8, %c0_9], %12 {strides = array<i32>} : memref<32x1xf32, #tpu.memory_space<vmem>>, vector<32x1xf32>,
    return
  }
  func.func @transform_0(%arg0: i32) -> (i32, i32) {
    %c0_i32 = arith.constant 0 : i32
    %c0_i32_0 = arith.constant 0 : i32
    return %arg0, %c0_i32 : i32, i32
  }
  func.func @transform_1(%arg0: i32) -> (i32, i32) {
    %c0_i32 = arith.constant 0 : i32
    %c0_i32_0 = arith.constant 0 : i32
    %c0_i32_1 = arith.constant 0 : i32
    return %c0_i32, %c0_i32_0 : i32, i32
  }
  func.func @transform_2(%arg0: i32) -> (i32, i32) {
    %c0_i32 = arith.constant 0 : i32
    %c0_i32_0 = arith.constant 0 : i32
    %c0_i32_1 = arith.constant 0 : i32
    return %c0_i32, %c0_i32_0 : i32, i32
  }
  func.func @transform_3(%arg0: i32) -> (i32, i32) {
    %c0_i32 = arith.constant 0 : i32
    %c0_i32_0 = arith.constant 0 : i32
    return %arg0, %c0_i32 : i32, i32
  }
}

</mosaic_0001>

<bundles_post_ra>
// kernel: tpu_custom_call.1
= control target key start
LH: loop header
LB: loop body
LE: loop exit
PB: predicated region body
PF: predicated region fallthrough
CT: control target
= control target key end

     0   :  { %s472_s14 = smov 0   ;;  %s508_s0 = inlined_call_operand.vmem [shape: f32[128,32], index: 0, kind: input, shape index: {}]   ;;  %s509_s1 = inlined_call_operand.vmem [shape: f32[32,1], index: 1, kind: input, shape index: {}]   ;;  %s510_s2 = inlined_call_operand.<no memory space> [shape: f32[1,1], index: 2, kind: input, shape index: {}]   ;;  %s511_s3 = inlined_call_operand.vmem [shape: f32[128,1], index: 3, kind: output, shape index: {}]  }
   0x1   :  { %8 = sst [smem:[#allocation2]] %s510_s2 }
   0x2 LB: > { %s368_s15 = sadd.s32 4294967295, %s447_s14   ;;  %p372_p0 = scmp.ge.s32.totalorder %s447_s14, 1  ;;  %s447_s14 = sphi %s472_s14, %s14_s14  }
   0x3   : > { %p139_p1 = scmp.lt.s32.totalorder %s447_s14, 5 }
   0x5   : > { %p140_p2 = pnand %p372_p0, %p139_p1 }
   0x6   : > { %v179_v0 = vld [vmem:[%s509_s1] sm:$0xff] (!%p140_p2)  ;;  %v180_v1 = vld [vmem:[%s509_s1 + $0x8] sm:$0xff] (!%p140_p2)  ;;  %v181_v2 = vld [vmem:[%s509_s1 + $0x10] sm:$0xff] (!%p140_p2)  ;;  %s373_s21 = sshll.u32 (!%p140_p2), %s368_s15, 2  ;;  %vm185_vm0 = vcmask (!%p140_p2), 261120   ;;  %s183_s28 = sld [smem:[#allocation2]] (!%p140_p2) }
   0x7   : > { %143 = sbr.rel (%p140_p2) target bundleno = 265 (0x109), region = 32  ;;  %v405_v3 = vpack.c.bf16 (!%p140_p2), %v180_v1, %v179_v0  ;;  %v182_v4 = vld [vmem:[%s509_s1 + $0x18] sm:$0xff] (!%p140_p2)  ;;  %p164_p3 = scmp.lt.s32.totalorder (!%p140_p2), %s373_s21, 15  ;;  %vm307_vm1 = vcmask (!%p140_p2), 7168  }
   0x8   : > { %v409_v5 = vpack.c.bf16 (!%p140_p2), %v182_v4, %v181_v2 }
   0x9   : > { %406 = vmatprep.subr.bf16.mxu0 (!%p140_p2), %v405_v3  ;;  %413 = vmatprep.subr.bf16.mxu1 (!%p140_p2), %v405_v3 }
   0xa   : > { %408 = vmatpush3.bf16.msra.mxu0 (!%p140_p2), %v405_v3  ;;  %415 = vmatpush3.bf16.msra.mxu1 (!%p140_p2), %v405_v3 }
   0xb   : > { %410 = vmatprep.subr.bf16.mxu0 (!%p140_p2), %v409_v5  ;;  %414 = vmatprep.subr.bf16.mxu1 (!%p140_p2), %v409_v5 }
   0xc   : > { %v184_v10 = vstv (!%p140_p2), %s183_s28 }
   0xe   : > { %s513_s21 = smov (!%p164_p3, %s373_s21), 15  ;;  %412 = vmatpush3.bf16.msra.mxu0 %v409_v5  ;;  %416 = vmatpush3.bf16.msra.mxu1 %v409_v5 }
   0xf   : > { %s374_s24 = sshll.u32 %s513_s21, 3 }
  0x10   : > { %s167_s27 = scalar_lea.vmem %s508_s0, %s374_s24  ;;  %s173_s4 = scalar_lea.vmem %s511_s3, %s374_s24 }
  0x11   : > { %v175_v6 = vld [vmem:[%s167_s27] sm:$0xff]  ;;  %v177_v7 = vld [vmem:[%s167_s27 + $0x10] sm:$0xff]  ;;  %v176_v8 = vld [vmem:[%s167_s27 + $0x8] sm:$0xff] }
  0x12   : > { %v178_v9 = vld [vmem:[%s167_s27 + $0x18] sm:$0xff]  ;;  %399 = vmatprep.mubr.msk.f32.mxu0 %vm185_vm0, %v175_v6  ;;  %402 = vmatprep.mubr.msk.f32.mxu1 %vm185_vm0, %v177_v7 }
  0x13   : > { %400 = vmatmul.mubr.msk.f32.vlgmr.msra.gmra.mrb[0].mxu0 %vm185_vm0, %v176_v8  ;;  %403 = vmatmul.mubr.msk.f32.vlgmr.msra.gmra.mrb[0].mxu1 %vm185_vm0, %v178_v9 }
  0xe6   : > { %v401_v11 = vpop.f32.mrb[0].mxu0  ;;  %v404_v12 = vpop.f32.mrb[0].mxu1 }
  0xe7   : > { %v270_v13 = vadd.f32 %v401_v11, %v184_v10  ;;  %v280_v14 = vadd.f32 %v404_v12, %v184_v10  ;;  %v264_v15 = vpop.f32.mrb[1].mxu0  ;;  %v274_v16 = vpop.f32.mrb[1].mxu1 }
  0xe8   : > { %v265_v17 = vadd.f32 %v264_v15, %v184_v10  ;;  %v275_v18 = vadd.f32 %v274_v16, %v184_v10 }
  0xe9   : > { %v284_v19 = vsub.f32 0.0, %v270_v13  ;;  %v286_v20 = vsub.f32 0.0, %v280_v14 }
  0xea   : > { %v283_v21 = vsub.f32 0.0, %v265_v17  ;;  %v285_v22 = vsub.f32 0.0, %v275_v18 }
  0xeb   : > { %v289_v23 = vmul.f32 1.442695, %v284_v19  ;;  %v293_v24 = vmul.f32 1.442695, %v286_v20 }
  0xec   : > { %v287_v25 = vmul.f32 1.442695, %v283_v21  ;;  %v291_v26 = vmul.f32 1.442695, %v285_v22 }
  0xed   : > { %425 = vpow2.f32 %v289_v23 }
  0xee   : > { %427 = vpow2.f32 %v293_v24 }
  0xef   : > { %429 = vpow2.f32 %v287_v25 }
  0xf0   : > { %431 = vpow2.f32 %v291_v26 }
  0xf7   : > { %v426_v27 = vpop.eup %425 }
  0xf8   : > { %v428_v28 = vpop.eup %427  ;;  %v296_v29 = vadd.f32 1.0, %v426_v27 }
  0xf9   : > { %v430_v30 = vpop.eup %429  ;;  %v298_v31 = vadd.f32 1.0, %v428_v28 }
  0xfa   : > { %v432_v32 = vpop.eup %431  ;;  %433 = vrcp.f32 %v296_v29  ;;  %v295_v33 = vadd.f32 1.0, %v430_v30 }
  0xfb   : > { %435 = vrcp.f32 %v298_v31  ;;  %v297_v34 = vadd.f32 1.0, %v432_v32 }
  0xfc   : > { %437 = vrcp.f32 %v295_v33 }
  0xfd   : > { %439 = vrcp.f32 %v297_v34 }
 0x104   : > { %v434_v35 = vpop.eup %433 }
 0x105   : > { %v436_v36 = vpop.eup %435  ;;  %309 = vst.msk [vmem:[%s173_s4 + $0x8] sm:$0xff] %vm307_vm1, %v434_v35 }
 0x106   : > { %v438_v37 = vpop.eup %437  ;;  %311 = vst.msk [vmem:[%s173_s4 + $0x18] sm:$0xff] %vm307_vm1, %v436_v36 }
 0x107   : > { %v440_v38 = vpop.eup %439  ;;  %308 = vst.msk [vmem:[%s173_s4] sm:$0xff] %vm307_vm1, %v438_v37 }
 0x108   : > { %310 = vst.msk [vmem:[%s173_s4 + $0x10] sm:$0xff] %vm307_vm1, %v440_v38 }
 0x109 PF: > { %s14_s14 = sadd.s32 1, %s447_s14  }
 0x10a   : > { %p11_p4 = scmp.ge.s32.totalorder %s14_s14, 6  }
 0x10c   :  { %13 = sbr.rel (!%p11_p4) target bundleno = 2 (0x2), region = 62 }

</bundles_post_ra>
